<compile_context>
chip_gen: v7x
topology: tpu7x:2x2x1
jax: 0.10.0
libtpu: 0.0.40
codegen_flags: <defaults>
</compile_context>

<pallas_src>
import functools

import jax
import jax.numpy as jnp
from jax.experimental import pallas as pl
from jax.experimental.pallas import tpu as pltpu


LN_EPS = 1e-5  # PyTorch nn.LayerNorm default


def _round_up(x, m):
    return ((x + m - 1) // m) * m


def patch_embed_kernel(p_ref, w_ref, prm_ref, o_ref, *, e_real, e_pad):
    # Projection: (tm, Kp) @ (Kp, Ep) -> (tm, Ep) on the MXU, f32 accumulation.
    y = jnp.dot(p_ref[...], w_ref[...], preferred_element_type=jnp.float32)

    prm = prm_ref[...]                       # (3, Ep): bias, gamma, beta
    y = y + prm[0:1, :]                      # bias broadcast over rows
    # Padded columns of y are exactly 0 (zero weight cols + zero bias).

    inv_e = 1.0 / float(e_real)              # compile-time constant
    mean = jnp.sum(y, axis=-1, keepdims=True) * inv_e
    centered = y - mean
    sumsq = jnp.sum(centered * centered, axis=-1, keepdims=True)
    if e_pad != e_real:
        # Padded columns contribute exactly mean^2 each to sumsq; subtract
        # analytically instead of an iota/compare/select mask (VPU filler).
        sumsq = sumsq - float(e_pad - e_real) * (mean * mean)
    var = sumsq * inv_e

    y_norm = centered * jax.lax.rsqrt(var + LN_EPS)
    # gamma/beta are zero in padded lanes -> padded output columns stay 0.
    o_ref[...] = (y_norm * prm[1:2, :] + prm[2:3, :]).astype(o_ref.dtype)


def prepare_patch_embed_params(conv_w, conv_b, gamma, beta,
                               matmul_dtype=jnp.bfloat16):
    """One-time weight/param packing. Hoist this out of the per-step jit."""
    E, C, ph, pw = conv_w.shape
    K = C * ph * pw
    Kp = _round_up(K, 128)
    Ep = max(128, _round_up(E, 128))
    w = conv_w.reshape(E, K).T                                  # (K, E)
    w = jnp.pad(w, ((0, Kp - K), (0, Ep - E)))
    if matmul_dtype is not None:
        w = w.astype(matmul_dtype)
    params = jnp.stack([conv_b, gamma, beta], axis=0).astype(jnp.float32)
    params = jnp.pad(params, ((0, 0), (0, Ep - E)))             # (3, Ep)
    return w, params


@functools.partial(
    jax.jit,
    static_argnames=("patch_size", "embed_dim", "matmul_dtype", "out_dtype"))
def patch_embed_forward(x, w, params, *, patch_size, embed_dim,
                        matmul_dtype=jnp.bfloat16, out_dtype=jnp.float32):
    """x: (B, C, H, W). w/params from prepare_patch_embed_params.
    Returns (B, N, embed_dim) in out_dtype."""
    B, C, H, W = x.shape
    ph, pw = patch_size
    assert H % ph == 0 and W % pw == 0
    Hp, Wp = H // ph, W // pw
    N = Hp * Wp
    M = B * N
    K = C * ph * pw
    Kp, Ep = w.shape
    E = embed_dim

    # Patch extraction is pure data movement; it stays in XLA but is allowed
    # to fuse into the pallas input DMA via allow_input_fusion below.
    # TODO(synk): express the patchify directly via a (B, Hp)-grid index_map
    # on the NCHW input so the fusion is guaranteed on every XLA version.
    patches = x.reshape(B, C, Hp, ph, Wp, pw)
    patches = patches.transpose(0, 2, 4, 1, 3, 5).reshape(M, K)
    if matmul_dtype is not None:
        patches = patches.astype(matmul_dtype)
    if Kp != K:
        patches = jnp.pad(patches, ((0, 0), (0, Kp - K)))

    in_bytes = jnp.dtype(patches.dtype).itemsize
    out_bytes = jnp.dtype(out_dtype).itemsize

    # Row tile: as large as the VMEM budget allows (512 rows ~ 85% of the HBM
    # roofline on v6e), derated for small M. The estimate counts the
    # auto-pipeliner's two buffers per operand (the grid-invariant weight is
    # not re-fetched but still gets two buffers) plus the f32 accumulator and
    # LN intermediates.
    def vmem_est(t):
        weight = 2 * Kp * Ep * in_bytes
        prm = 2 * 3 * Ep * 4
        io = 2 * (t * Kp * in_bytes + t * Ep * out_bytes)
        acc = 2 * t * Ep * 4
        return weight + prm + io + acc

    budget = 24 * (1 << 20)        # fits scoped VMEM on v5e/v6e and v7x (64 MiB/TC)
    tm = 512
    while tm > 8 and vmem_est(tm) > budget:
        tm //= 2
    tm = min(tm, _round_up(M, 8))                # don't exceed the row count
    tm = max(8, (tm // 8) * 8)                   # sublane aligned
    if pl.cdiv(M, tm) < 2 and tm >= 16:
        tm = max(8, ((tm // 2) // 8) * 8)        # >=2 steps -> both v7x cores

    Mp = _round_up(M, tm)
    if Mp != M:
        patches = jnp.pad(patches, ((0, Mp - M), (0, 0)))

    grid = (Mp // tm,)
    kernel = functools.partial(patch_embed_kernel, e_real=E, e_pad=Ep)
    vmem_limit = int(min(max(vmem_est(tm) + (4 << 20), 16 << 20), 32 << 20))

    out = pl.pallas_call(
        kernel,
        out_shape=jax.ShapeDtypeStruct((Mp, Ep), out_dtype),
        grid_spec=pltpu.PrefetchScalarGridSpec(
            num_scalar_prefetch=0,
            grid=grid,
            in_specs=[
                pl.BlockSpec((tm, Kp), lambda i: (i, 0)),     # patch rows
                # Weight/params are grid-invariant: the pipeliner skips the
                # re-fetch but still allocates two buffers (counted above).
                # TODO(synk): pipeline_mode=pl.Buffered(1) once single-buffered
                # invariant operands are confirmed supported on all jaxlibs.
                pl.BlockSpec((Kp, Ep), lambda i: (0, 0)),     # projection W
                pl.BlockSpec((3, Ep), lambda i: (0, 0)),      # bias/gamma/beta
            ],
            out_specs=pl.BlockSpec((tm, Ep), lambda i: (i, 0)),
        ),
        compiler_params=pltpu.CompilerParams(
            dimension_semantics=("parallel",),
            vmem_limit_bytes=vmem_limit,
            allow_input_fusion=[True, False, False],
        ),
    )(patches, w, params)

    if Mp != M or Ep != E:
        out = out[:M, :E]          # only pays when padding was actually added
    return out.reshape(B, N, E)


def patch_embed_pallas(x, conv_w, conv_b, gamma, beta, patch_size,
                       matmul_dtype=jnp.bfloat16, out_dtype=jnp.float32):
    """Convenience wrapper (prepare + forward). For repeated step calls, run
    prepare_patch_embed_params once and call patch_embed_forward per step."""
    B, C, H, W = x.shape
    ph, pw = patch_size
    E = conv_w.shape[0]
    w, params = prepare_patch_embed_params(conv_w, conv_b, gamma, beta,
                                           matmul_dtype=matmul_dtype)
    out = patch_embed_forward(x, w, params, patch_size=(ph, pw), embed_dim=E,
                              matmul_dtype=matmul_dtype, out_dtype=out_dtype)
    return out, (H // ph, W // pw)


def patch_embed_ref(x, conv_w, conv_b, gamma, beta, patch_size):
    """Pure-JAX reference matching PyTorch semantics (correctness check)."""
    ph, pw = patch_size
    y = jax.lax.conv_general_dilated(
        x, conv_w, window_strides=(ph, pw), padding="VALID",
        dimension_numbers=("NCHW", "OIHW", "NCHW"))
    y = y + conv_b[None, :, None, None]
    B, E, Hp, Wp = y.shape
    y = y.reshape(B, E, Hp * Wp).transpose(0, 2, 1)          # (B, N, E)
    mean = jnp.mean(y, axis=-1, keepdims=True)
    var = jnp.mean((y - mean) ** 2, axis=-1, keepdims=True)
    y = (y - mean) / jnp.sqrt(var + LN_EPS) * gamma + beta
    return y, (Hp, Wp)


if __name__ == "__main__":
    # Small shapes consistent with the module: img_size=16, patch_size=4,
    # in_chans=4, embed_dim=32, batch=2.
    B, C, H, W = 2, 4, 16, 16
    ph, pw = 4, 4
    E = 32

    key = jax.random.PRNGKey(0)
    kx, kw, kb, kg, kbeta = jax.random.split(key, 5)

    x = jax.random.normal(kx, (B, C, H, W), dtype=jnp.float32)
    conv_w = jax.random.normal(kw, (E, C, ph, pw), dtype=jnp.float32) * 0.05
    conv_b = jax.random.normal(kb, (E,), dtype=jnp.float32) * 0.05
    gamma = jnp.ones((E,), dtype=jnp.float32) + 0.1 * jax.random.normal(
        kg, (E,), dtype=jnp.float32)
    beta = 0.1 * jax.random.normal(kbeta, (E,), dtype=jnp.float32)

    ref, (Hr, Wr) = patch_embed_ref(x, conv_w, conv_b, gamma, beta, (ph, pw))

    # Default (fast) path: bf16 matmul inputs, f32 accumulation + f32 LN.
    out_bf16, (Hp, Wp) = patch_embed_pallas(
        x, conv_w, conv_b, gamma, beta, (ph, pw))
    out_bf16 = jax.block_until_ready(out_bf16)
    assert (Hp, Wp) == (Hr, Wr) == (H // ph, W // pw)
    assert out_bf16.shape == (B, Hp * Wp, E)
    assert jnp.allclose(out_bf16, ref, atol=2e-2, rtol=2e-2), float(
        jnp.max(jnp.abs(out_bf16 - ref)))

    # f32 path for a tight numerical check of the kernel math itself.
    out_f32, _ = patch_embed_pallas(
        x, conv_w, conv_b, gamma, beta, (ph, pw), matmul_dtype=None)
    out_f32 = jax.block_until_ready(out_f32)
    assert jnp.allclose(out_f32, ref, atol=1e-4, rtol=1e-4)

    print("KERNEL_OK")
</pallas_src>

<mosaic_0001>
module attributes {stable_mosaic.version = 11 : i64} {
  func.func @patch_embed_kernel(%arg0: i32, %arg1: memref<16x128xbf16, #tpu.memory_space<vmem>>, %arg2: memref<128x128xbf16, #tpu.memory_space<vmem>>, %arg3: memref<3x128xf32, #tpu.memory_space<vmem>>, %arg4: memref<16x128xf32, #tpu.memory_space<vmem>>) attributes {dimension_semantics = [#tpu.dimension_semantics<parallel>], iteration_bounds = array<i64: 2>, scalar_prefetch = 0 : i64, scratch_operands = 0 : i64, tpu.core_type = #tpu.core_type<tc>, window_params = [{transform_indices = @transform_0, window_bounds = array<i64: 16, 128>}, {pipeline_mode = #tpu.pipeline_mode<synchronous>, transform_indices = @transform_1, window_bounds = array<i64: 128, 128>}, {pipeline_mode = #tpu.pipeline_mode<synchronous>, transform_indices = @transform_2, window_bounds = array<i64: 3, 128>}, {transform_indices = @transform_3, window_bounds = array<i64: 16, 128>}]} {
    %c0 = arith.constant 0 : index
    %c0_0 = arith.constant 0 : index
    %0 = vector.load %arg1[%c0, %c0_0] : memref<16x128xbf16, #tpu.memory_space<vmem>>, vector<16x128xbf16>
    %c0_1 = arith.constant 0 : index
    %c0_2 = arith.constant 0 : index
    %1 = vector.load %arg2[%c0_1, %c0_2] : memref<128x128xbf16, #tpu.memory_space<vmem>>, vector<128x128xbf16>
    %cst = arith.constant dense<0.000000e+00> : vector<16x128xf32>
    %2 = tpu.matmul %0, %1, %cst {dimension_numbers = #tpu.dot_dimension_numbers<[1], [0], [0], [1], [0, 0, 1, 1], [], []>} : vector<16x128xbf16>, vector<128x128xbf16>, vector<16x128xf32> -> vector<16x128xf32>
    %c0_3 = arith.constant 0 : index
    %c0_4 = arith.constant 0 : index
    %3 = vector.load %arg3[%c0_3, %c0_4] : memref<3x128xf32, #tpu.memory_space<vmem>>, vector<3x128xf32>
    %4 = vector.extract_strided_slice %3 {offsets = [0, 0], sizes = [1, 128], strides = [1, 1]} : vector<3x128xf32> to vector<1x128xf32>
    %5 = vector.broadcast %4 : vector<1x128xf32> to vector<16x128xf32>
    %6 = arith.addf %2, %5 : vector<16x128xf32>
    %cst_5 = arith.constant dense<0.000000e+00> : vector<16xf32>
    %7 = vector.multi_reduction <add>, %6, %cst_5 [1] : vector<16x128xf32> to vector<16xf32>
    %8 = vector.shape_cast %7 : vector<16xf32> to vector<16x1xf32>
    %cst_6 = arith.constant 3.125000e-02 : f32
    %9 = vector.broadcast %cst_6 : f32 to vector<16x1xf32>
    %10 = arith.mulf %8, %9 : vector<16x1xf32>
    %11 = vector.broadcast %10 : vector<16x1xf32> to vector<16x128xf32>
    %12 = arith.subf %6, %11 : vector<16x128xf32>
    %13 = arith.mulf %12, %12 : vector<16x128xf32>
    %cst_7 = arith.constant dense<0.000000e+00> : vector<16xf32>
    %14 = vector.multi_reduction <add>, %13, %cst_7 [1] : vector<16x128xf32> to vector<16xf32>
    %15 = vector.shape_cast %14 : vector<16xf32> to vector<16x1xf32>
    %16 = arith.mulf %10, %10 : vector<16x1xf32>
    %cst_8 = arith.constant 9.600000e+01 : f32
    %17 = vector.broadcast %cst_8 : f32 to vector<16x1xf32>
    %18 = arith.mulf %17, %16 : vector<16x1xf32>
    %19 = arith.subf %15, %18 : vector<16x1xf32>
    %cst_9 = arith.constant 3.125000e-02 : f32
    %20 = vector.broadcast %cst_9 : f32 to vector<16x1xf32>
    %21 = arith.mulf %19, %20 : vector<16x1xf32>
    %cst_10 = arith.constant 9.99999974E-6 : f32
    %22 = vector.broadcast %cst_10 : f32 to vector<16x1xf32>
    %23 = arith.addf %21, %22 : vector<16x1xf32>
    %24 = math.rsqrt %23 : vector<16x1xf32>
    %25 = vector.broadcast %24 : vector<16x1xf32> to vector<16x128xf32>
    %26 = arith.mulf %12, %25 : vector<16x128xf32>
    %27 = vector.extract_strided_slice %3 {offsets = [1, 0], sizes = [1, 128], strides = [1, 1]} : vector<3x128xf32> to vector<1x128xf32>
    %28 = vector.broadcast %27 : vector<1x128xf32> to vector<16x128xf32>
    %29 = arith.mulf %26, %28 : vector<16x128xf32>
    %30 = vector.extract_strided_slice %3 {offsets = [2, 0], sizes = [1, 128], strides = [1, 1]} : vector<3x128xf32> to vector<1x128xf32>
    %31 = vector.broadcast %30 : vector<1x128xf32> to vector<16x128xf32>
    %32 = arith.addf %29, %31 : vector<16x128xf32>
    %c0_11 = arith.constant 0 : index
    %c0_12 = arith.constant 0 : index
    %33 = vector.load %arg4[%c0_11, %c0_12] : memref<16x128xf32, #tpu.memory_space<vmem>>, vector<16x128xf32>
    tpu.vector_store %arg4[%c0_11, %c0_12], %32 {strides = array<i32>} : memref<16x128xf32, #tpu.memory_space<vmem>>, vector<16x128xf32>,
    return
  }
  func.func @transform_0(%arg0: i32) -> (i32, i32) {
    %c0_i32 = arith.constant 0 : i32
    %c0_i32_0 = arith.constant 0 : i32
    return %arg0, %c0_i32 : i32, i32
  }
  func.func @transform_1(%arg0: i32) -> (i32, i32) {
    %c0_i32 = arith.constant 0 : i32
    %c0_i32_0 = arith.constant 0 : i32
    %c0_i32_1 = arith.constant 0 : i32
    return %c0_i32, %c0_i32_0 : i32, i32
  }
  func.func @transform_2(%arg0: i32) -> (i32, i32) {
    %c0_i32 = arith.constant 0 : i32
    %c0_i32_0 = arith.constant 0 : i32
    %c0_i32_1 = arith.constant 0 : i32
    return %c0_i32, %c0_i32_0 : i32, i32
  }
  func.func @transform_3(%arg0: i32) -> (i32, i32) {
    %c0_i32 = arith.constant 0 : i32
    %c0_i32_0 = arith.constant 0 : i32
    return %arg0, %c0_i32 : i32, i32
  }
}

</mosaic_0001>

<bundles_post_ra>
// kernel: patch_embed_forward.2
= control target key start
LH: loop header
LB: loop body
LE: loop exit
PB: predicated region body
PF: predicated region fallthrough
CT: control target
= control target key end

     0   :  { %s795_s0 = inlined_call_operand.vmem [shape: bf16[128,128], index: 0, kind: input, shape index: {}]   ;;  %s796_s1 = inlined_call_operand.vmem [shape: f32[3,128], index: 1, kind: input, shape index: {}]   ;;  %s797_s2 = inlined_call_operand.vmem [shape: bf16[32,64], index: 2, kind: input, shape index: {}]   ;;  %s798_s3 = inlined_call_operand.<no memory space> [shape: bf16[], index: 3, kind: input, shape index: {}]   ;;  %s799_s4 = inlined_call_operand.hbm [shape: f32[32,128], index: 4, kind: output, shape index: {}]  }
   0x1   :  { %v9_v0 = vstv %s798_s3 }
   0x2   :  { %v662_v1 = vunpack.i.l.bf16 %v9_v0 }
   0x3   :  { %14 = vsyncpa [#allocation8], 0 }
   0x4   :  { %16 = vsyncpa [#allocation8 + $0x1], 0  ;;  %s664_s17 = smov 0   ;;  %s666_s18 = smov 0  }
   0x5   :  { %s668_s19 = smov 0   ;;  %s670_s20 = smov 0  }
   0x6 LB: > { %s685_s3 = sadd.s32 4294967295, %s627_s20   ;;  %s457_s21 = sadd.s32 4294967294, %s627_s20   ;;  %s627_s20 = sphi %s670_s20, %s805_s20   ;;  %s623_s19 = sphi %s668_s19, %s804_s19   ;;  %s619_s18 = sphi %s666_s18, %s803_s18   ;;  %s615_s17 = sphi %s664_s17, %s802_s17  }
   0x7   : > { %s689_s22 = sadd.s32 1, %s627_s20   ;;  %s97_s23 = sadd.s32 1, %s623_s19 }
   0x8   : > { %s94_s24 = ssub.s32 %s627_s20, %s689_s22  ;;  %p107_p0 = scmp.ne.s32.totalorder %s623_s19, %s619_s18 }
   0x9   : > { %p95_p1 = scmp.eq.s32.totalorder %s94_s24, 0  ;;  %p108_p2 = scmp.eq.s32.totalorder %s685_s3, 1 }
   0xa   : > { %p113_p3 = scmp.ne.s32.totalorder %s619_s18, %s615_s17  ;;  %p114_p4 = scmp.eq.s32.totalorder %s457_s21, 1 }
   0xb   : > { %s700_s25 = scalar_select %p95_p1, %s623_s19, %s97_s23  }
   0xc   : > { %p702_p5 = por %p108_p2, %p107_p0  ;;  %p706_p6 = por %p114_p4, %p113_p3 }
   0xd   : > { %p460_p7 = scmp.ge.s32.totalorder %s627_s20, 1  ;;  %p147_p8 = scmp.lt.s32.totalorder %s627_s20, 3 }
   0xf   : > { %p148_p9 = pnand %p460_p7, %p147_p8 }
  0x11   : > { %151 = sbr.rel (%p148_p9) target bundleno = 603 (0x25b), region = 32 }
  0x18   : > { %v552_v2 = vld [vmem:[%s795_s0] sm:$0xff]   ;;  %v629_v3 = vmov 0.0   ;;  %v190_v4 = vlaneseq  ;;  %v553_v5 = vld [vmem:[%s795_s0 + $0x8] sm:$0xff]   ;;  %vm630_vm0 = vmmov 0   ;;  %s462_s6 = sshll.u32 %s685_s3, 1  ;;  %v554_v7 = vld [vmem:[%s795_s0 + $0x10] sm:$0xff]  }
  0x19   : > { %489 = vmatprep.subr.bf16.mxu0 %v629_v3  ;;  %505 = vmatprep.mubr.msk.bf16.mxu0 %vm630_vm0, %v629_v3  ;;  %p172_p10 = scmp.lt.s32.totalorder %s462_s6, 3  ;;  %v555_v9 = vld [vmem:[%s795_s0 + $0x18] sm:$0xff]   ;;  %v556_v16 = vld [vmem:[%s795_s0 + $0x20] sm:$0xff]   ;;  %v557_v17 = vld [vmem:[%s795_s0 + $0x28] sm:$0xff]   ;;  %s168_s7 = sand.u32 1, %s619_s18  }
  0x1a   : > { %490 = vmatpush3.bf16.msra.mxu0 %v552_v2  ;;  %v191_v6 = vand.u32 127, %v190_v4  ;;  %v558_v18 = vld [vmem:[%s795_s0 + $0x30] sm:$0xff]   ;;  %v559_v19 = vld [vmem:[%s795_s0 + $0x38] sm:$0xff]   ;;  %v241_v21 = vshrl.u32 %v190_v4, 7  ;;  %v239_v23 = vld [vmem:[%s796_s1] sm:$0x7] }
  0x1b   : > { %491 = vmatprep.subr.bf16.mxu0 %v629_v3  ;;  %s807_s6 = smov (!%p172_p10, %s462_s6), 3  ;;  %s461_s8 = sshll.u32 %s168_s7, 4 }
  0x1c   : > { %s463_s9 = sshll.u32 %s807_s6, 2  ;;  %vm193_vm1 = vcmp.lt.s32.totalorder %v191_v6, 64  ;;  %v242_v22 = vsub.s32 0, %v241_v21  ;;  %v369_v51 = vsub.s32 1, %v241_v21  ;;  %v375_v52 = vsub.s32 2, %v241_v21  ;;  %s170_s10 = scalar_lea.vmem [#allocation7], %s461_s8 }
  0x1d   : > { %s175_s12 = scalar_lea.vmem %s797_s2, %s463_s9  ;;  %s479_s9 = sshll.u32 %s685_s3, 8 }
  0x1e   : > { %492 = vmatpush3.bf16.msra.mxu0 %v553_v5  ;;  %v187_v8 = vld [vmem:[%s175_s12] sm:$0xff]   ;;  %v243_v24 = vrot.slane %v239_v23, %v242_v22  ;;  %v370_v53 = vrot.slane %v239_v23, %v369_v51  ;;  %v376_v55 = vrot.slane %v239_v23, %v375_v52  ;;  %s395_s11 = sshll.u32 %s170_s10, 4  ;;  %s750_s14 = scalar_lea.hbm %s799_s4, %s479_s9  ;;  %s752_s11 = int_to_ptr.vmem [resolvable:$true] %s395_s11 }
  0x1f   : > { %493 = vmatprep.subr.bf16.mxu0 %v629_v3  ;;  %v188_v10 = vunpack.c.l.bf16 %v187_v8  ;;  %v209_v11 = vunpack.c.h.bf16 %v187_v8  ;;  %s754_s15 = scalar_lea.sflag [#allocation8], %s168_s7  ;;  %s565_s16 = scalar_lea.vmem %s752_s11, 256 }
  0x20   : > { %p566_p11 = scmp.ne.s32.totalorder %s752_s11, %s565_s16  ;;  %s631_s3 = smov [#allocation7]  }
  0x21   : > { %v194_v12 = vsel %vm193_vm1, %v188_v10, %v662_v1  ;;  %v215_v13 = vsel %vm193_vm1, %v209_v11, %v662_v1  ;;  %s569_s21 = sshll.u32 %s631_s3, 4  ;;  %s570_s21 = int_to_ptr.vmem [resolvable:$false] %s569_s21 }
  0x22   : > { %494 = vmatpush3.bf16.msra.mxu0 %v554_v7  ;;  %v195_v14 = vpack.c.bf16 %v629_v3, %v194_v12  ;;  %v217_v15 = vpack.c.bf16 %v629_v3, %v215_v13  ;;  %p567_p12 = pnand %p566_p11, %p702_p5  ;;  %s571_s23 = scalar_lea.vmem %s570_s21, 512 }
  0x23   : > { %495 = vmatprep.subr.bf16.mxu0 %v629_v3  ;;  %p572_p0 = scmp.lt.s32.totalorder %s752_s11, %s570_s21  ;;  %p573_p1 = scmp.lt.s32.totalorder %s571_s23, %s565_s16 }
  0x24   : > { %197 = vst [vmem:[#allocation9] sm:$0xf] %v195_v14  ;;  %219 = vst [vmem:[#allocation9 + $0x4] sm:$0xf] %v217_v15  ;;  %p568_p13 = pneg %p567_p12 }
  0x25   : > { %p574_p2 = por %p573_p1, %p572_p0 }
  0x26   : > { %496 = vmatpush3.bf16.msra.mxu0 %v555_v9 }
  0x27   : > { %497 = vmatprep.subr.bf16.mxu0 %v629_v3  ;;  %p575_p3 = pnand %p574_p2, %p568_p13 }
  0x2a   : > { %498 = vmatpush3.bf16.msra.mxu0 %v556_v16 }
  0x2b   : > { %499 = vmatprep.subr.bf16.mxu0 %v629_v3  ;;  %v560_v20 = vld [vmem:[#allocation9] sm:$0xff]  }
  0x2e   : > { %500 = vmatpush3.bf16.msra.mxu0 %v557_v17 }
  0x2f   : > { %501 = vmatprep.subr.bf16.mxu0 %v629_v3 }
  0x32   : > { %502 = vmatpush3.bf16.msra.mxu0 %v558_v18 }
  0x33   : > { %503 = vmatprep.subr.bf16.mxu0 %v629_v3 }
  0x36   : > { %504 = vmatpush3.bf16.msra.mxu0 %v559_v19 }
  0x39   : > { %506 = vmatmul.mubr.bf16.vlgmr.msra.gmra.mrb[0].mxu0 %v560_v20 }
 0x10c   : > { %v332_v25 = vpop.f32.mrb[0].mxu0 }
 0x10d   : > { %v333_v26 = vadd.f32 %v332_v25, %v243_v24  ;;  %v507_v27 = vpop.f32.mrb[1].mxu0 }
 0x10e   : > { %v335_v28 = vpop.f32.mrb[2].mxu0 }
 0x10f   : > { %339 = vadd.xlane.f32.xlu0 %v333_v26  ;;  %v508_v29 = vpop.f32.mrb[3].mxu0  ;;  %v336_v30 = vadd.f32 %v335_v28, %v243_v24 }
 0x113   : > { %341 = vadd.xlane.f32.xlu0 %v336_v30 }
 0x19c   : > { %v340_v31 = vpop.xlane.xlu0 %339 }
 0x19d   : > { %v343_v32 = vmul.f32 0.03125, %v340_v31 }
 0x19f   : > { %v345_v33 = vsub.f32 %v333_v26, %v343_v32  ;;  %v353_v39 = vmul.f32 %v343_v32, %v343_v32 }
 0x1a0   : > { %v342_v34 = vpop.xlane.xlu0 %341 }
 0x1a1   : > { %v344_v35 = vmul.f32 0.03125, %v342_v34  ;;  %v347_v36 = vmul.f32 %v345_v33, %v345_v33  ;;  %v355_v41 = vmul.f32 96.0, %v353_v39 }
 0x1a3   : > { %v346_v37 = vsub.f32 %v336_v30, %v344_v35  ;;  %349 = vadd.xlane.f32.xlu1 %v347_v36  ;;  %v354_v40 = vmul.f32 %v344_v35, %v344_v35 }
 0x1a5   : > { %v348_v38 = vmul.f32 %v346_v37, %v346_v37  ;;  %v356_v44 = vmul.f32 96.0, %v354_v40 }
 0x1a7   : > { %351 = vadd.xlane.f32.xlu1 %v348_v38 }
 0x230   : > { %v350_v42 = vpop.xlane.xlu1 %349 }
 0x231   : > { %v357_v43 = vsub.f32 %v350_v42, %v355_v41 }
 0x233   : > { %v359_v45 = vmul.f32 0.03125, %v357_v43 }
 0x234   : > { %v352_v46 = vpop.xlane.xlu1 %351 }
 0x235   : > { %v361_v47 = vadd.f32 1e-05, %v359_v45  ;;  %v358_v48 = vsub.f32 %v352_v46, %v356_v44 }
 0x237   : > { %561 = vrsqrt.f32 %v361_v47  ;;  %v360_v49 = vmul.f32 0.03125, %v358_v48 }
 0x239   : > { %v362_v50 = vadd.f32 1e-05, %v360_v49 }
 0x23b   : > { %563 = vrsqrt.f32 %v362_v50 }
 0x241   : > { %v562_v54 = vpop.eup %561 }
 0x242   : > { %v365_v56 = vmul.f32 %v562_v54, %v345_v33 }
 0x244   : > { %v371_v57 = vmul.f32 %v370_v53, %v365_v56 }
 0x245   : > { %v564_v58 = vpop.eup %563 }
 0x246   : > { %v366_v59 = vmul.f32 %v564_v58, %v346_v37  ;;  %v377_v60 = vadd.f32 %v376_v55, %v371_v57 }
 0x248   : > { %v372_v61 = vmul.f32 %v370_v53, %v366_v59  ;;  %379 = vst [vmem:[%s170_s10] sm:$0xff] %v377_v60 }
 0x24a   : > { %v378_v62 = vadd.f32 %v376_v55, %v372_v61 }
 0x24c   : > { %380 = vst [vmem:[%s170_s10 + $0x8] sm:$0xff] %v378_v62 }
 0x24d   : > { %578 = shalt.err (!%p575_p3)
}
 0x24e   : > { %s579_s24 = scalar_lea.hbm %s750_s14, 256  ;;  %s583_s30 = scalar_lea.hbm %s799_s4, 512 }
 0x24f   : > { %p580_p4 = scmp.ne.s32.totalorder %s750_s14, %s579_s24  ;;  %p584_p9 = scmp.lt.u32.totalorder %s750_s14, %s799_s4 }
 0x250   : > { %p585_p10 = scmp.lt.u32.totalorder %s583_s30, %s579_s24  ;;  %p587_p12 = scmp.lt.u32.totalorder %s579_s24, %s750_s14 }
 0x251   : > { %p581_p7 = pnand %p580_p4, %p702_p5 }
 0x252   : > { %p586_p11 = por %p585_p10, %p584_p9 }
 0x253   : > { %p582_p8 = pneg %p581_p7 }
 0x254   : > { %p588_p13 = por %p587_p12, %p586_p11 }
 0x256   : > { %p589_p0 = pnand %p588_p13, %p582_p8 }
 0x258   : > { %592 = shalt.err (!%p589_p0)
}
 0x259   : > { %s632_s7 = smov 128   ;;  %s633_s8 = smov 8  }
 0x25a   : > { %509 = dma.vmem_to_hbm [thread:$0]  (%p702_p5), %s752_s11, 256, %s750_s14, %s754_s15, %s632_s7, %s632_s7, %s633_s8  }
 0x25b PF: > { %p515_p1 = scmp.ge.s32.totalorder %s627_s20, 2  ;;  %s410_s9 = sand.u32 1, %s615_s17  }
 0x25c   : > { %s411_s10 = scalar_lea.sflag [#allocation8], %s410_s9 }
 0x25d   : > { %p512_p2 = pnand %p515_p1, %p706_p6 }
 0x25f   : > { %610 = dma.done.wait (!%p512_p2), %s411_s10, 256  }
 0x260   : > { %612 = vsyncadd (!%p512_p2), %s411_s10, 4294967040  ;;  %p19_p3 = scmp.ge.s32.totalorder %s689_s22, 4   ;;  %s802_s17 = smov %s619_s18 }
 0x261   : > { %s803_s18 = smov %s623_s19  ;;  %s804_s19 = smov %s700_s25 }
 0x262   : > { %s805_s20 = smov %s689_s22  ;;  %21 = sbr.rel (!%p19_p3) target bundleno = 6 (0x6), region = 69 }
 0x269   :  { %416 = vsyncpa [#allocation8], 1 }
 0x26a   :  { %418 = vsyncpa [#allocation8 + $0x1], 1 }

</bundles_post_ra>
